<compile_context>
chip_gen: v5e
topology: v5e:2x2
jax: 0.10.0
libtpu: 0.0.40
codegen_flags: <defaults>
</compile_context>

<pallas_src>
import functools

import jax
import jax.numpy as jnp
from jax import lax
from jax.experimental import pallas as pl
from jax.experimental.pallas import tpu as pltpu


def _round_up(x, m):
    return (x + m - 1) // m * m


def _sigmoid(x):
    # One EUP transcendental (tanh) instead of exp + divide.
    return 0.5 * jnp.tanh(0.5 * x) + 0.5


def _lstm_chunk_kernel(x_ref, wih_ref, bias_ref, whh_ref, w3_ref, out_ref,
                       h_ref, c_ref, hs_ref, *, hidden, bt, tc, unroll):
    """One (batch-tile, time-chunk) grid step of the LSTM recurrence.

    x_ref    : (Tc*Bt, 1)   raw inputs, row = t_local*Bt + b_local
    wih_ref  : (1, Gp)      input weights (input_size == 1), zero-padded to Gp
    bias_ref : (1, Gp)      b_ih + b_hh, zero-padded
    whh_ref  : (H, Gp)      W_hh^T, gate columns zero-padded to Gp
    w3_ref   : (H, Op)      W3^T, zero-padded output lanes
    out_ref  : (Tc*Bt, Op)  chunk output (written once per chunk)
    h_ref/c_ref : (Bt, H)   recurrent state, persists across time chunks
    hs_ref   : (Tc*Bt, H)   per-chunk hidden-state history
    """
    # Fresh state at the first time chunk of every batch tile.
    @pl.when(pl.program_id(1) == 0)
    def _():
        h_ref[...] = jnp.zeros_like(h_ref)
        c_ref[...] = jnp.zeros_like(c_ref)

    # Tiny loop-invariant rows held in vregs.
    wih = wih_ref[...]          # (1, Gp)
    bias = bias_ref[...]        # (1, Gp)

    def step(t, carry):
        h_prev, c_prev = carry                                 # (Bt, H) each
        row = pl.multiple_of(t * bt, bt)
        x_t = x_ref[pl.ds(row, bt), :]                         # (Bt, 1)
        # Rank-1 input projection (VPU broadcast-FMA, off the h-dependency
        # chain) + recurrent matmul (MXU).
        gates = (x_t * wih + bias
                 + jnp.dot(h_prev, whh_ref[...],
                           preferred_element_type=jnp.float32))  # (Bt, Gp)
        # PyTorch gate order [i, f, g, o]; static sub-128 lane slices.
        i_g = _sigmoid(gates[:, 0 * hidden:1 * hidden])
        f_g = _sigmoid(gates[:, 1 * hidden:2 * hidden])
        g_g = jnp.tanh(gates[:, 2 * hidden:3 * hidden])
        o_g = _sigmoid(gates[:, 3 * hidden:4 * hidden])
        c_new = f_g * c_prev + i_g * g_g
        h_new = o_g * jnp.tanh(c_new)
        hs_ref[pl.ds(row, bt), :] = h_new
        return (h_new, c_new)

    h_fin, c_fin = lax.fori_loop(0, tc, step, (h_ref[...], c_ref[...]),
                                 unroll=unroll)
    # Persist state once per chunk (only needed across grid steps).
    h_ref[...] = h_fin
    c_ref[...] = c_fin

    # Single lane-dense W3 projection for the whole chunk.
    out_ref[...] = jnp.dot(hs_ref[...], w3_ref[...],
                           preferred_element_type=jnp.float32
                           ).astype(out_ref.dtype)


def custom_lstm_pallas(x, w_ih, w_hh, b_ih, b_hh, w3, *, time_chunk=64,
                       unroll=8):
    """x: (B, T) float32. Returns (B, T, O) float32 matching the PyTorch module."""
    f32 = jnp.float32
    B, T = x.shape
    H4, I = w_ih.shape
    H = H4 // 4
    G = 4 * H
    O = w3.shape[0]
    assert I == 1, "CustomLSTM uses input_size=1 (x.unsqueeze(2))"

    # --- tiling parameters -------------------------------------------------
    Bt = min(_round_up(B, 8), 256)          # batch tile (sublane dim)
    Bp = _round_up(B, Bt)
    n_bt = Bp // Bt

    time_chunk = _round_up(max(time_chunk, unroll), unroll)
    Tc = min(time_chunk, _round_up(T, unroll))   # don't over-pad short seqs
    Tp = _round_up(T, Tc)
    n_chunks = Tp // Tc

    Gp = _round_up(G, 128)                  # total gate width, lane-aligned
    Op = _round_up(O, 128)                  # lane-dense output stores

    # --- operands -----------------------------------------------------------
    # x permuted so each (chunk, batch-tile) block is a contiguous
    # (Tc*Bt, 1) slab, row-major (t_local, b_local).
    x_p = jnp.pad(x.astype(f32), ((0, Bp - B), (0, Tp - T)))        # (Bp, Tp)
    x_p = x_p.reshape(n_bt, Bt, n_chunks, Tc)
    x_p = jnp.transpose(x_p, (2, 0, 3, 1))                          # (nc, nbt, Tc, Bt)
    x_rows = x_p.reshape(n_chunks * n_bt * Tc * Bt, 1)

    wih_row = jnp.pad(w_ih[:, 0].astype(f32), (0, Gp - G)).reshape(1, Gp)
    bias_row = jnp.pad((b_ih + b_hh).astype(f32), (0, Gp - G)).reshape(1, Gp)
    whh_t = jnp.pad(jnp.transpose(w_hh, (1, 0)).astype(f32),
                    ((0, 0), (0, Gp - G)))                          # (H, Gp)
    w3_t = jnp.pad(jnp.transpose(w3, (1, 0)).astype(f32),
                   ((0, 0), (0, Op - O)))                           # (H, Op)

    total_rows = n_chunks * n_bt * Tc * Bt

    # --- VMEM budget (raise scoped limit only when the defaults won't fit) --
    def _buf_bytes(rows, cols, bufs=1):
        return bufs * _round_up(rows, 8) * _round_up(cols, 128) * 4

    vmem_est = (_buf_bytes(Tc * Bt, 1, 2) + 2 * _buf_bytes(1, Gp, 2)
                + _buf_bytes(H, Gp, 2) + _buf_bytes(H, Op, 2)
                + _buf_bytes(Tc * Bt, Op, 2)
                + 2 * _buf_bytes(Bt, H) + _buf_bytes(Tc * Bt, H))
    cp_kwargs = dict(dimension_semantics=("parallel", "arbitrary"))
    if vmem_est > 12 * (1 << 20):           # v5e default scoped VMEM is 16 MiB
        # Cap at 64 MiB (v7x physical VMEM); larger configs need a smaller Tc.
        cp_kwargs["vmem_limit_bytes"] = min(int(vmem_est * 1.25) + (4 << 20),
                                            64 << 20)

    kernel = functools.partial(_lstm_chunk_kernel, hidden=H, bt=Bt, tc=Tc,
                               unroll=unroll)

    out_flat = pl.pallas_call(
        kernel,
        out_shape=jax.ShapeDtypeStruct((total_rows, Op), f32),
        grid_spec=pltpu.PrefetchScalarGridSpec(
            num_scalar_prefetch=0,
            grid=(n_bt, n_chunks),
            in_specs=[
                pl.BlockSpec((Tc * Bt, 1), lambda b, c: (c * n_bt + b, 0)),  # x
                pl.BlockSpec((1, Gp), lambda b, c: (0, 0)),                  # w_ih
                pl.BlockSpec((1, Gp), lambda b, c: (0, 0)),                  # bias
                pl.BlockSpec((H, Gp), lambda b, c: (0, 0)),                  # W_hh^T
                pl.BlockSpec((H, Op), lambda b, c: (0, 0)),                  # W3^T
            ],
            out_specs=pl.BlockSpec((Tc * Bt, Op), lambda b, c: (c * n_bt + b, 0)),
            scratch_shapes=[
                pltpu.VMEM((Bt, H), f32),          # h state (persists across chunks)
                pltpu.VMEM((Bt, H), f32),          # c state (persists across chunks)
                pltpu.VMEM((Tc * Bt, H), f32),     # per-chunk hidden history
            ],
        ),
        compiler_params=pltpu.CompilerParams(**cp_kwargs),
    )(x_rows, wih_row, bias_row, whh_t, w3_t)

    # Undo the (chunk, batch-tile, t, b) row permutation and drop padding.
    out = out_flat.reshape(n_chunks, n_bt, Tc, Bt, Op)
    out = jnp.transpose(out, (1, 3, 0, 2, 4)).reshape(Bp, Tp, Op)
    return out[:B, :T, :O]


def custom_lstm_ref(x, w_ih, w_hh, b_ih, b_hh, w3):
    """Pure-JAX reference (lax.scan), PyTorch LSTM semantics."""
    B, T = x.shape
    H = w_hh.shape[1]
    w_ih_vec = w_ih[:, 0]
    bias = b_ih + b_hh

    def step(carry, x_t):
        h, c = carry
        gates = x_t[:, None] * w_ih_vec[None, :] + h @ w_hh.T + bias
        i_g, f_g, g_g, o_g = jnp.split(gates, 4, axis=1)
        i_g = jax.nn.sigmoid(i_g)
        f_g = jax.nn.sigmoid(f_g)
        g_g = jnp.tanh(g_g)
        o_g = jax.nn.sigmoid(o_g)
        c = f_g * c + i_g * g_g
        h = o_g * jnp.tanh(c)
        return (h, c), h

    init = (jnp.zeros((B, H), jnp.float32), jnp.zeros((B, H), jnp.float32))
    _, hs = lax.scan(step, init, jnp.transpose(x, (1, 0)))   # hs: (T, B, H)
    return jnp.einsum('tbh,oh->bto', hs, w3)


if __name__ == "__main__":
    # Small shapes consistent with the module: input_size is forced to 1 by
    # x.unsqueeze(2); batch=2, seq=8, hidden=32, output=4.
    B, T, H, O = 2, 8, 32, 4
    I = 1

    key = jax.random.PRNGKey(0)
    k_x, k_wih, k_whh, k_bih, k_bhh, k_w3 = jax.random.split(key, 6)

    # Deterministic init mimicking PyTorch: LSTM params ~ U(-1/sqrt(H), 1/sqrt(H)),
    # W3 = rand(O, H) - 0.5 ~ U(-0.5, 0.5).
    s = 1.0 / (H ** 0.5)
    w_ih = jax.random.uniform(k_wih, (4 * H, I), jnp.float32, -s, s)
    w_hh = jax.random.uniform(k_whh, (4 * H, H), jnp.float32, -s, s)
    b_ih = jax.random.uniform(k_bih, (4 * H,), jnp.float32, -s, s)
    b_hh = jax.random.uniform(k_bhh, (4 * H,), jnp.float32, -s, s)
    w3 = jax.random.uniform(k_w3, (O, H), jnp.float32, -0.5, 0.5)

    x = jax.random.normal(k_x, (B, T), jnp.float32)

    ys = jax.block_until_ready(custom_lstm_pallas(x, w_ih, w_hh, b_ih, b_hh, w3))
    ys_ref = jax.block_until_ready(custom_lstm_ref(x, w_ih, w_hh, b_ih, b_hh, w3))

    assert ys.shape == (B, T, O), ys.shape
    max_err = float(jnp.max(jnp.abs(ys - ys_ref)))
    assert jnp.allclose(ys, ys_ref, rtol=1e-4, atol=1e-4), max_err

    print("KERNEL_OK")
</pallas_src>

<mosaic_0001>
module attributes {stable_mosaic.version = 11 : i64} {
  func.func @_lstm_chunk_kernel(%arg0: i32, %arg1: i32, %arg2: memref<64x1xf32, #tpu.memory_space<vmem>>, %arg3: memref<1x128xf32, #tpu.memory_space<vmem>>, %arg4: memref<1x128xf32, #tpu.memory_space<vmem>>, %arg5: memref<32x128xf32, #tpu.memory_space<vmem>>, %arg6: memref<32x128xf32, #tpu.memory_space<vmem>>, %arg7: memref<64x128xf32, #tpu.memory_space<vmem>>, %arg8: memref<8x32xf32, #tpu.memory_space<vmem>>, %arg9: memref<8x32xf32, #tpu.memory_space<vmem>>, %arg10: memref<64x32xf32, #tpu.memory_space<vmem>>) attributes {dimension_semantics = [#tpu.dimension_semantics<parallel>, #tpu.dimension_semantics<arbitrary>], iteration_bounds = array<i64: 1, 1>, scalar_prefetch = 0 : i64, scratch_operands = 3 : i64, tpu.core_type = #tpu.core_type<tc>, window_params = [{transform_indices = @transform_0, window_bounds = array<i64: 64, 1>}, {pipeline_mode = #tpu.pipeline_mode<synchronous>, transform_indices = @transform_1, window_bounds = array<i64: 1, 128>}, {pipeline_mode = #tpu.pipeline_mode<synchronous>, transform_indices = @transform_2, window_bounds = array<i64: 1, 128>}, {pipeline_mode = #tpu.pipeline_mode<synchronous>, transform_indices = @transform_3, window_bounds = array<i64: 32, 128>}, {pipeline_mode = #tpu.pipeline_mode<synchronous>, transform_indices = @transform_4, window_bounds = array<i64: 32, 128>}, {transform_indices = @transform_5, window_bounds = array<i64: 64, 128>}]} {
    %c0_i32 = arith.constant 0 : i32
    %0 = arith.cmpi eq, %arg1, %c0_i32 : i32
    %1 = arith.extui %0 : i1 to i32
    %c0_i32_0 = arith.constant 0 : i32
    %2 = arith.cmpi ne, %1, %c0_i32_0 : i32
    scf.if %2 {
      %cst_139 = arith.constant 0.000000e+00 : f32
      %373 = vector.broadcast %cst_139 : f32 to vector<8x32xf32>
      %c0_140 = arith.constant 0 : index
      %c0_141 = arith.constant 0 : index
      %374 = vector.load %arg8[%c0_140, %c0_141] : memref<8x32xf32, #tpu.memory_space<vmem>>, vector<8x32xf32>
      tpu.vector_store %arg8[%c0_140, %c0_141], %373 {strides = array<i32>} : memref<8x32xf32, #tpu.memory_space<vmem>>, vector<8x32xf32>,
      %cst_142 = arith.constant 0.000000e+00 : f32
      %375 = vector.broadcast %cst_142 : f32 to vector<8x32xf32>
      %c0_143 = arith.constant 0 : index
      %c0_144 = arith.constant 0 : index
      %376 = vector.load %arg9[%c0_143, %c0_144] : memref<8x32xf32, #tpu.memory_space<vmem>>, vector<8x32xf32>
      tpu.vector_store %arg9[%c0_143, %c0_144], %375 {strides = array<i32>} : memref<8x32xf32, #tpu.memory_space<vmem>>, vector<8x32xf32>,
    } else {
    }
    %c0 = arith.constant 0 : index
    %c0_1 = arith.constant 0 : index
    %3 = vector.load %arg3[%c0, %c0_1] : memref<1x128xf32, #tpu.memory_space<vmem>>, vector<1x128xf32>
    %c0_2 = arith.constant 0 : index
    %c0_3 = arith.constant 0 : index
    %4 = vector.load %arg4[%c0_2, %c0_3] : memref<1x128xf32, #tpu.memory_space<vmem>>, vector<1x128xf32>
    %c0_4 = arith.constant 0 : index
    %c0_5 = arith.constant 0 : index
    %5 = vector.load %arg8[%c0_4, %c0_5] : memref<8x32xf32, #tpu.memory_space<vmem>>, vector<8x32xf32>
    %c0_6 = arith.constant 0 : index
    %c0_7 = arith.constant 0 : index
    %6 = vector.load %arg9[%c0_6, %c0_7] : memref<8x32xf32, #tpu.memory_space<vmem>>, vector<8x32xf32>
    %c0_i32_8 = arith.constant 0 : i32
    %c8_i32 = arith.constant 8 : i32
    %7 = arith.muli %c0_i32_8, %c8_i32 : i32
    %8 = tpu.assume_multiple %7, 8 : i32
    %9 = arith.index_cast %8 : i32 to index
    %c0_9 = arith.constant 0 : index
    %10 = vector.load %arg2[%9, %c0_9] : memref<64x1xf32, #tpu.memory_space<vmem>>, vector<8x1xf32>
    %11 = vector.broadcast %10 : vector<8x1xf32> to vector<8x128xf32>
    %12 = vector.broadcast %3 : vector<1x128xf32> to vector<8x128xf32>
    %13 = arith.mulf %11, %12 : vector<8x128xf32>
    %14 = vector.broadcast %4 : vector<1x128xf32> to vector<8x128xf32>
    %15 = arith.addf %13, %14 : vector<8x128xf32>
    %c0_10 = arith.constant 0 : index
    %c0_11 = arith.constant 0 : index
    %16 = vector.load %arg5[%c0_10, %c0_11] : memref<32x128xf32, #tpu.memory_space<vmem>>, vector<32x128xf32>
    %cst = arith.constant dense<0.000000e+00> : vector<8x128xf32>
    %17 = tpu.matmul %5, %16, %cst {dimension_numbers = #tpu.dot_dimension_numbers<[1], [0], [0], [1], [0, 0, 1, 1], [], []>} : vector<8x32xf32>, vector<32x128xf32>, vector<8x128xf32> -> vector<8x128xf32>
    %18 = arith.addf %15, %17 : vector<8x128xf32>
    %19 = vector.extract_strided_slice %18 {offsets = [0, 0], sizes = [8, 32], strides = [1, 1]} : vector<8x128xf32> to vector<8x32xf32>
    %cst_12 = arith.constant 5.000000e-01 : f32
    %20 = vector.broadcast %cst_12 : f32 to vector<8x32xf32>
    %21 = arith.mulf %20, %19 : vector<8x32xf32>
    %22 = math.tanh %21 : vector<8x32xf32>
    %cst_13 = arith.constant 5.000000e-01 : f32
    %23 = vector.broadcast %cst_13 : f32 to vector<8x32xf32>
    %24 = arith.mulf %23, %22 : vector<8x32xf32>
    %cst_14 = arith.constant 5.000000e-01 : f32
    %25 = vector.broadcast %cst_14 : f32 to vector<8x32xf32>
    %26 = arith.addf %24, %25 : vector<8x32xf32>
    %27 = vector.extract_strided_slice %18 {offsets = [0, 32], sizes = [8, 32], strides = [1, 1]} : vector<8x128xf32> to vector<8x32xf32>
    %cst_15 = arith.constant 5.000000e-01 : f32
    %28 = vector.broadcast %cst_15 : f32 to vector<8x32xf32>
    %29 = arith.mulf %28, %27 : vector<8x32xf32>
    %30 = math.tanh %29 : vector<8x32xf32>
    %cst_16 = arith.constant 5.000000e-01 : f32
    %31 = vector.broadcast %cst_16 : f32 to vector<8x32xf32>
    %32 = arith.mulf %31, %30 : vector<8x32xf32>
    %cst_17 = arith.constant 5.000000e-01 : f32
    %33 = vector.broadcast %cst_17 : f32 to vector<8x32xf32>
    %34 = arith.addf %32, %33 : vector<8x32xf32>
    %35 = vector.extract_strided_slice %18 {offsets = [0, 64], sizes = [8, 32], strides = [1, 1]} : vector<8x128xf32> to vector<8x32xf32>
    %36 = math.tanh %35 : vector<8x32xf32>
    %37 = vector.extract_strided_slice %18 {offsets = [0, 96], sizes = [8, 32], strides = [1, 1]} : vector<8x128xf32> to vector<8x32xf32>
    %cst_18 = arith.constant 5.000000e-01 : f32
    %38 = vector.broadcast %cst_18 : f32 to vector<8x32xf32>
    %39 = arith.mulf %38, %37 : vector<8x32xf32>
    %40 = math.tanh %39 : vector<8x32xf32>
    %cst_19 = arith.constant 5.000000e-01 : f32
    %41 = vector.broadcast %cst_19 : f32 to vector<8x32xf32>
    %42 = arith.mulf %41, %40 : vector<8x32xf32>
    %cst_20 = arith.constant 5.000000e-01 : f32
    %43 = vector.broadcast %cst_20 : f32 to vector<8x32xf32>
    %44 = arith.addf %42, %43 : vector<8x32xf32>
    %45 = arith.mulf %34, %6 : vector<8x32xf32>
    %46 = arith.mulf %26, %36 : vector<8x32xf32>
    %47 = arith.addf %45, %46 : vector<8x32xf32>
    %48 = math.tanh %47 : vector<8x32xf32>
    %49 = arith.mulf %44, %48 : vector<8x32xf32>
    %50 = arith.index_cast %8 : i32 to index
    %c0_21 = arith.constant 0 : index
    %51 = vector.load %arg10[%50, %c0_21] : memref<64x32xf32, #tpu.memory_space<vmem>>, vector<8x32xf32>
    tpu.vector_store %arg10[%50, %c0_21], %49 {strides = array<i32>} : memref<64x32xf32, #tpu.memory_space<vmem>>, vector<8x32xf32>,
    %c1_i32 = arith.constant 1 : i32
    %c8_i32_22 = arith.constant 8 : i32
    %52 = arith.muli %c1_i32, %c8_i32_22 : i32
    %53 = tpu.assume_multiple %52, 8 : i32
    %54 = arith.index_cast %53 : i32 to index
    %c0_23 = arith.constant 0 : index
    %55 = vector.load %arg2[%54, %c0_23] : memref<64x1xf32, #tpu.memory_space<vmem>>, vector<8x1xf32>
    %56 = vector.broadcast %55 : vector<8x1xf32> to vector<8x128xf32>
    %57 = vector.broadcast %3 : vector<1x128xf32> to vector<8x128xf32>
    %58 = arith.mulf %56, %57 : vector<8x128xf32>
    %59 = vector.broadcast %4 : vector<1x128xf32> to vector<8x128xf32>
    %60 = arith.addf %58, %59 : vector<8x128xf32>
    %c0_24 = arith.constant 0 : index
    %c0_25 = arith.constant 0 : index
    %61 = vector.load %arg5[%c0_24, %c0_25] : memref<32x128xf32, #tpu.memory_space<vmem>>, vector<32x128xf32>
    %cst_26 = arith.constant dense<0.000000e+00> : vector<8x128xf32>
    %62 = tpu.matmul %49, %61, %cst_26 {dimension_numbers = #tpu.dot_dimension_numbers<[1], [0], [0], [1], [0, 0, 1, 1], [], []>} : vector<8x32xf32>, vector<32x128xf32>, vector<8x128xf32> -> vector<8x128xf32>
    %63 = arith.addf %60, %62 : vector<8x128xf32>
    %64 = vector.extract_strided_slice %63 {offsets = [0, 0], sizes = [8, 32], strides = [1, 1]} : vector<8x128xf32> to vector<8x32xf32>
    %cst_27 = arith.constant 5.000000e-01 : f32
    %65 = vector.broadcast %cst_27 : f32 to vector<8x32xf32>
    %66 = arith.mulf %65, %64 : vector<8x32xf32>
    %67 = math.tanh %66 : vector<8x32xf32>
    %cst_28 = arith.constant 5.000000e-01 : f32
    %68 = vector.broadcast %cst_28 : f32 to vector<8x32xf32>
    %69 = arith.mulf %68, %67 : vector<8x32xf32>
    %cst_29 = arith.constant 5.000000e-01 : f32
    %70 = vector.broadcast %cst_29 : f32 to vector<8x32xf32>
    %71 = arith.addf %69, %70 : vector<8x32xf32>
    %72 = vector.extract_strided_slice %63 {offsets = [0, 32], sizes = [8, 32], strides = [1, 1]} : vector<8x128xf32> to vector<8x32xf32>
    %cst_30 = arith.constant 5.000000e-01 : f32
    %73 = vector.broadcast %cst_30 : f32 to vector<8x32xf32>
    %74 = arith.mulf %73, %72 : vector<8x32xf32>
    %75 = math.tanh %74 : vector<8x32xf32>
    %cst_31 = arith.constant 5.000000e-01 : f32
    %76 = vector.broadcast %cst_31 : f32 to vector<8x32xf32>
    %77 = arith.mulf %76, %75 : vector<8x32xf32>
    %cst_32 = arith.constant 5.000000e-01 : f32
    %78 = vector.broadcast %cst_32 : f32 to vector<8x32xf32>
    %79 = arith.addf %77, %78 : vector<8x32xf32>
    %80 = vector.extract_strided_slice %63 {offsets = [0, 64], sizes = [8, 32], strides = [1, 1]} : vector<8x128xf32> to vector<8x32xf32>
    %81 = math.tanh %80 : vector<8x32xf32>
    %82 = vector.extract_strided_slice %63 {offsets = [0, 96], sizes = [8, 32], strides = [1, 1]} : vector<8x128xf32> to vector<8x32xf32>
    %cst_33 = arith.constant 5.000000e-01 : f32
    %83 = vector.broadcast %cst_33 : f32 to vector<8x32xf32>
    %84 = arith.mulf %83, %82 : vector<8x32xf32>
    %85 = math.tanh %84 : vector<8x32xf32>
    %cst_34 = arith.constant 5.000000e-01 : f32
    %86 = vector.broadcast %cst_34 : f32 to vector<8x32xf32>
    %87 = arith.mulf %86, %85 : vector<8x32xf32>
    %cst_35 = arith.constant 5.000000e-01 : f32
    %88 = vector.broadcast %cst_35 : f32 to vector<8x32xf32>
    %89 = arith.addf %87, %88 : vector<8x32xf32>
    %90 = arith.mulf %79, %47 : vector<8x32xf32>
    %91 = arith.mulf %71, %81 : vector<8x32xf32>
    %92 = arith.addf %90, %91 : vector<8x32xf32>
    %93 = math.tanh %92 : vector<8x32xf32>
    %94 = arith.mulf %89, %93 : vector<8x32xf32>
    %95 = arith.index_cast %53 : i32 to index
    %c0_36 = arith.constant 0 : index
    %96 = vector.load %arg10[%95, %c0_36] : memref<64x32xf32, #tpu.memory_space<vmem>>, vector<8x32xf32>
    tpu.vector_store %arg10[%95, %c0_36], %94 {strides = array<i32>} : memref<64x32xf32, #tpu.memory_space<vmem>>, vector<8x32xf32>,
    %c2_i32 = arith.constant 2 : i32
    %c8_i32_37 = arith.constant 8 : i32
    %97 = arith.muli %c2_i32, %c8_i32_37 : i32
    %98 = tpu.assume_multiple %97, 8 : i32
    %99 = arith.index_cast %98 : i32 to index
    %c0_38 = arith.constant 0 : index
    %100 = vector.load %arg2[%99, %c0_38] : memref<64x1xf32, #tpu.memory_space<vmem>>, vector<8x1xf32>
    %101 = vector.broadcast %100 : vector<8x1xf32> to vector<8x128xf32>
    %102 = vector.broadcast %3 : vector<1x128xf32> to vector<8x128xf32>
    %103 = arith.mulf %101, %102 : vector<8x128xf32>
    %104 = vector.broadcast %4 : vector<1x128xf32> to vector<8x128xf32>
    %105 = arith.addf %103, %104 : vector<8x128xf32>
    %c0_39 = arith.constant 0 : index
    %c0_40 = arith.constant 0 : index
    %106 = vector.load %arg5[%c0_39, %c0_40] : memref<32x128xf32, #tpu.memory_space<vmem>>, vector<32x128xf32>
    %cst_41 = arith.constant dense<0.000000e+00> : vector<8x128xf32>
    %107 = tpu.matmul %94, %106, %cst_41 {dimension_numbers = #tpu.dot_dimension_numbers<[1], [0], [0], [1], [0, 0, 1, 1], [], []>} : vector<8x32xf32>, vector<32x128xf32>, vector<8x128xf32> -> vector<8x128xf32>
    %108 = arith.addf %105, %107 : vector<8x128xf32>
    %109 = vector.extract_strided_slice %108 {offsets = [0, 0], sizes = [8, 32], strides = [1, 1]} : vector<8x128xf32> to vector<8x32xf32>
    %cst_42 = arith.constant 5.000000e-01 : f32
    %110 = vector.broadcast %cst_42 : f32 to vector<8x32xf32>
    %111 = arith.mulf %110, %109 : vector<8x32xf32>
    %112 = math.tanh %111 : vector<8x32xf32>
    %cst_43 = arith.constant 5.000000e-01 : f32
    %113 = vector.broadcast %cst_43 : f32 to vector<8x32xf32>
    %114 = arith.mulf %113, %112 : vector<8x32xf32>
    %cst_44 = arith.constant 5.000000e-01 : f32
    %115 = vector.broadcast %cst_44 : f32 to vector<8x32xf32>
    %116 = arith.addf %114, %115 : vector<8x32xf32>
    %117 = vector.extract_strided_slice %108 {offsets = [0, 32], sizes = [8, 32], strides = [1, 1]} : vector<8x128xf32> to vector<8x32xf32>
    %cst_45 = arith.constant 5.000000e-01 : f32
    %118 = vector.broadcast %cst_45 : f32 to vector<8x32xf32>
    %119 = arith.mulf %118, %117 : vector<8x32xf32>
    %120 = math.tanh %119 : vector<8x32xf32>
    %cst_46 = arith.constant 5.000000e-01 : f32
    %121 = vector.broadcast %cst_46 : f32 to vector<8x32xf32>
    %122 = arith.mulf %121, %120 : vector<8x32xf32>
    %cst_47 = arith.constant 5.000000e-01 : f32
    %123 = vector.broadcast %cst_47 : f32 to vector<8x32xf32>
    %124 = arith.addf %122, %123 : vector<8x32xf32>
    %125 = vector.extract_strided_slice %108 {offsets = [0, 64], sizes = [8, 32], strides = [1, 1]} : vector<8x128xf32> to vector<8x32xf32>
    %126 = math.tanh %125 : vector<8x32xf32>
    %127 = vector.extract_strided_slice %108 {offsets = [0, 96], sizes = [8, 32], strides = [1, 1]} : vector<8x128xf32> to vector<8x32xf32>
    %cst_48 = arith.constant 5.000000e-01 : f32
    %128 = vector.broadcast %cst_48 : f32 to vector<8x32xf32>
    %129 = arith.mulf %128, %127 : vector<8x32xf32>
    %130 = math.tanh %129 : vector<8x32xf32>
    %cst_49 = arith.constant 5.000000e-01 : f32
    %131 = vector.broadcast %cst_49 : f32 to vector<8x32xf32>
    %132 = arith.mulf %131, %130 : vector<8x32xf32>
    %cst_50 = arith.constant 5.000000e-01 : f32
    %133 = vector.broadcast %cst_50 : f32 to vector<8x32xf32>
    %134 = arith.addf %132, %133 : vector<8x32xf32>
    %135 = arith.mulf %124, %92 : vector<8x32xf32>
    %136 = arith.mulf %116, %126 : vector<8x32xf32>
    %137 = arith.addf %135, %136 : vector<8x32xf32>
    %138 = math.tanh %137 : vector<8x32xf32>
    %139 = arith.mulf %134, %138 : vector<8x32xf32>
    %140 = arith.index_cast %98 : i32 to index
    %c0_51 = arith.constant 0 : index
    %141 = vector.load %arg10[%140, %c0_51] : memref<64x32xf32, #tpu.memory_space<vmem>>, vector<8x32xf32>
    tpu.vector_store %arg10[%140, %c0_51], %139 {strides = array<i32>} : memref<64x32xf32, #tpu.memory_space<vmem>>, vector<8x32xf32>,
    %c3_i32 = arith.constant 3 : i32
    %c8_i32_52 = arith.constant 8 : i32
    %142 = arith.muli %c3_i32, %c8_i32_52 : i32
    %143 = tpu.assume_multiple %142, 8 : i32
    %144 = arith.index_cast %143 : i32 to index
    %c0_53 = arith.constant 0 : index
    %145 = vector.load %arg2[%144, %c0_53] : memref<64x1xf32, #tpu.memory_space<vmem>>, vector<8x1xf32>
    %146 = vector.broadcast %145 : vector<8x1xf32> to vector<8x128xf32>
    %147 = vector.broadcast %3 : vector<1x128xf32> to vector<8x128xf32>
    %148 = arith.mulf %146, %147 : vector<8x128xf32>
    %149 = vector.broadcast %4 : vector<1x128xf32> to vector<8x128xf32>
    %150 = arith.addf %148, %149 : vector<8x128xf32>
    %c0_54 = arith.constant 0 : index
    %c0_55 = arith.constant 0 : index
    %151 = vector.load %arg5[%c0_54, %c0_55] : memref<32x128xf32, #tpu.memory_space<vmem>>, vector<32x128xf32>
    %cst_56 = arith.constant dense<0.000000e+00> : vector<8x128xf32>
    %152 = tpu.matmul %139, %151, %cst_56 {dimension_numbers = #tpu.dot_dimension_numbers<[1], [0], [0], [1], [0, 0, 1, 1], [], []>} : vector<8x32xf32>, vector<32x128xf32>, vector<8x128xf32> -> vector<8x128xf32>
    %153 = arith.addf %150, %152 : vector<8x128xf32>
    %154 = vector.extract_strided_slice %153 {offsets = [0, 0], sizes = [8, 32], strides = [1, 1]} : vector<8x128xf32> to vector<8x32xf32>
    %cst_57 = arith.constant 5.000000e-01 : f32
    %155 = vector.broadcast %cst_57 : f32 to vector<8x32xf32>
    %156 = arith.mulf %155, %154 : vector<8x32xf32>
    %157 = math.tanh %156 : vector<8x32xf32>
    %cst_58 = arith.constant 5.000000e-01 : f32
    %158 = vector.broadcast %cst_58 : f32 to vector<8x32xf32>
    %159 = arith.mulf %158, %157 : vector<8x32xf32>
    %cst_59 = arith.constant 5.000000e-01 : f32
    %160 = vector.broadcast %cst_59 : f32 to vector<8x32xf32>
    %161 = arith.addf %159, %160 : vector<8x32xf32>
    %162 = vector.extract_strided_slice %153 {offsets = [0, 32], sizes = [8, 32], strides = [1, 1]} : vector<8x128xf32> to vector<8x32xf32>
    %cst_60 = arith.constant 5.000000e-01 : f32
    %163 = vector.broadcast %cst_60 : f32 to vector<8x32xf32>
    %164 = arith.mulf %163, %162 : vector<8x32xf32>
    %165 = math.tanh %164 : vector<8x32xf32>
    %cst_61 = arith.constant 5.000000e-01 : f32
    %166 = vector.broadcast %cst_61 : f32 to vector<8x32xf32>
    %167 = arith.mulf %166, %165 : vector<8x32xf32>
    %cst_62 = arith.constant 5.000000e-01 : f32
    %168 = vector.broadcast %cst_62 : f32 to vector<8x32xf32>
    %169 = arith.addf %167, %168 : vector<8x32xf32>
    %170 = vector.extract_strided_slice %153 {offsets = [0, 64], sizes = [8, 32], strides = [1, 1]} : vector<8x128xf32> to vector<8x32xf32>
    %171 = math.tanh %170 : vector<8x32xf32>
    %172 = vector.extract_strided_slice %153 {offsets = [0, 96], sizes = [8, 32], strides = [1, 1]} : vector<8x128xf32> to vector<8x32xf32>
    %cst_63 = arith.constant 5.000000e-01 : f32
    %173 = vector.broadcast %cst_63 : f32 to vector<8x32xf32>
    %174 = arith.mulf %173, %172 : vector<8x32xf32>
    %175 = math.tanh %174 : vector<8x32xf32>
    %cst_64 = arith.constant 5.000000e-01 : f32
    %176 = vector.broadcast %cst_64 : f32 to vector<8x32xf32>
    %177 = arith.mulf %176, %175 : vector<8x32xf32>
    %cst_65 = arith.constant 5.000000e-01 : f32
    %178 = vector.broadcast %cst_65 : f32 to vector<8x32xf32>
    %179 = arith.addf %177, %178 : vector<8x32xf32>
    %180 = arith.mulf %169, %137 : vector<8x32xf32>
    %181 = arith.mulf %161, %171 : vector<8x32xf32>
    %182 = arith.addf %180, %181 : vector<8x32xf32>
    %183 = math.tanh %182 : vector<8x32xf32>
    %184 = arith.mulf %179, %183 : vector<8x32xf32>
    %185 = arith.index_cast %143 : i32 to index
    %c0_66 = arith.constant 0 : index
    %186 = vector.load %arg10[%185, %c0_66] : memref<64x32xf32, #tpu.memory_space<vmem>>, vector<8x32xf32>
    tpu.vector_store %arg10[%185, %c0_66], %184 {strides = array<i32>} : memref<64x32xf32, #tpu.memory_space<vmem>>, vector<8x32xf32>,
    %c4_i32 = arith.constant 4 : i32
    %c8_i32_67 = arith.constant 8 : i32
    %187 = arith.muli %c4_i32, %c8_i32_67 : i32
    %188 = tpu.assume_multiple %187, 8 : i32
    %189 = arith.index_cast %188 : i32 to index
    %c0_68 = arith.constant 0 : index
    %190 = vector.load %arg2[%189, %c0_68] : memref<64x1xf32, #tpu.memory_space<vmem>>, vector<8x1xf32>
    %191 = vector.broadcast %190 : vector<8x1xf32> to vector<8x128xf32>
    %192 = vector.broadcast %3 : vector<1x128xf32> to vector<8x128xf32>
    %193 = arith.mulf %191, %192 : vector<8x128xf32>
    %194 = vector.broadcast %4 : vector<1x128xf32> to vector<8x128xf32>
    %195 = arith.addf %193, %194 : vector<8x128xf32>
    %c0_69 = arith.constant 0 : index
    %c0_70 = arith.constant 0 : index
    %196 = vector.load %arg5[%c0_69, %c0_70] : memref<32x128xf32, #tpu.memory_space<vmem>>, vector<32x128xf32>
    %cst_71 = arith.constant dense<0.000000e+00> : vector<8x128xf32>
    %197 = tpu.matmul %184, %196, %cst_71 {dimension_numbers = #tpu.dot_dimension_numbers<[1], [0], [0], [1], [0, 0, 1, 1], [], []>} : vector<8x32xf32>, vector<32x128xf32>, vector<8x128xf32> -> vector<8x128xf32>
    %198 = arith.addf %195, %197 : vector<8x128xf32>
    %199 = vector.extract_strided_slice %198 {offsets = [0, 0], sizes = [8, 32], strides = [1, 1]} : vector<8x128xf32> to vector<8x32xf32>
    %cst_72 = arith.constant 5.000000e-01 : f32
    %200 = vector.broadcast %cst_72 : f32 to vector<8x32xf32>
    %201 = arith.mulf %200, %199 : vector<8x32xf32>
    %202 = math.tanh %201 : vector<8x32xf32>
    %cst_73 = arith.constant 5.000000e-01 : f32
    %203 = vector.broadcast %cst_73 : f32 to vector<8x32xf32>
    %204 = arith.mulf %203, %202 : vector<8x32xf32>
    %cst_74 = arith.constant 5.000000e-01 : f32
    %205 = vector.broadcast %cst_74 : f32 to vector<8x32xf32>
    %206 = arith.addf %204, %205 : vector<8x32xf32>
    %207 = vector.extract_strided_slice %198 {offsets = [0, 32], sizes = [8, 32], strides = [1, 1]} : vector<8x128xf32> to vector<8x32xf32>
    %cst_75 = arith.constant 5.000000e-01 : f32
    %208 = vector.broadcast %cst_75 : f32 to vector<8x32xf32>
    %209 = arith.mulf %208, %207 : vector<8x32xf32>
    %210 = math.tanh %209 : vector<8x32xf32>
    %cst_76 = arith.constant 5.000000e-01 : f32
    %211 = vector.broadcast %cst_76 : f32 to vector<8x32xf32>
    %212 = arith.mulf %211, %210 : vector<8x32xf32>
    %cst_77 = arith.constant 5.000000e-01 : f32
    %213 = vector.broadcast %cst_77 : f32 to vector<8x32xf32>
    %214 = arith.addf %212, %213 : vector<8x32xf32>
    %215 = vector.extract_strided_slice %198 {offsets = [0, 64], sizes = [8, 32], strides = [1, 1]} : vector<8x128xf32> to vector<8x32xf32>
    %216 = math.tanh %215 : vector<8x32xf32>
    %217 = vector.extract_strided_slice %198 {offsets = [0, 96], sizes = [8, 32], strides = [1, 1]} : vector<8x128xf32> to vector<8x32xf32>
    %cst_78 = arith.constant 5.000000e-01 : f32
    %218 = vector.broadcast %cst_78 : f32 to vector<8x32xf32>
    %219 = arith.mulf %218, %217 : vector<8x32xf32>
    %220 = math.tanh %219 : vector<8x32xf32>
    %cst_79 = arith.constant 5.000000e-01 : f32
    %221 = vector.broadcast %cst_79 : f32 to vector<8x32xf32>
    %222 = arith.mulf %221, %220 : vector<8x32xf32>
    %cst_80 = arith.constant 5.000000e-01 : f32
    %223 = vector.broadcast %cst_80 : f32 to vector<8x32xf32>
    %224 = arith.addf %222, %223 : vector<8x32xf32>
    %225 = arith.mulf %214, %182 : vector<8x32xf32>
    %226 = arith.mulf %206, %216 : vector<8x32xf32>
    %227 = arith.addf %225, %226 : vector<8x32xf32>
    %228 = math.tanh %227 : vector<8x32xf32>
    %229 = arith.mulf %224, %228 : vector<8x32xf32>
    %230 = arith.index_cast %188 : i32 to index
    %c0_81 = arith.constant 0 : index
    %231 = vector.load %arg10[%230, %c0_81] : memref<64x32xf32, #tpu.memory_space<vmem>>, vector<8x32xf32>
    tpu.vector_store %arg10[%230, %c0_81], %229 {strides = array<i32>} : memref<64x32xf32, #tpu.memory_space<vmem>>, vector<8x32xf32>,
    %c5_i32 = arith.constant 5 : i32
    %c8_i32_82 = arith.constant 8 : i32
    %232 = arith.muli %c5_i32, %c8_i32_82 : i32
    %233 = tpu.assume_multiple %232, 8 : i32
    %234 = arith.index_cast %233 : i32 to index
    %c0_83 = arith.constant 0 : index
    %235 = vector.load %arg2[%234, %c0_83] : memref<64x1xf32, #tpu.memory_space<vmem>>, vector<8x1xf32>
    %236 = vector.broadcast %235 : vector<8x1xf32> to vector<8x128xf32>
    %237 = vector.broadcast %3 : vector<1x128xf32> to vector<8x128xf32>
    %238 = arith.mulf %236, %237 : vector<8x128xf32>
    %239 = vector.broadcast %4 : vector<1x128xf32> to vector<8x128xf32>
    %240 = arith.addf %238, %239 : vector<8x128xf32>
    %c0_84 = arith.constant 0 : index
    %c0_85 = arith.constant 0 : index
    %241 = vector.load %arg5[%c0_84, %c0_85] : memref<32x128xf32, #tpu.memory_space<vmem>>, vector<32x128xf32>
    %cst_86 = arith.constant dense<0.000000e+00> : vector<8x128xf32>
    %242 = tpu.matmul %229, %241, %cst_86 {dimension_numbers = #tpu.dot_dimension_numbers<[1], [0], [0], [1], [0, 0, 1, 1], [], []>} : vector<8x32xf32>, vector<32x128xf32>, vector<8x128xf32> -> vector<8x128xf32>
    %243 = arith.addf %240, %242 : vector<8x128xf32>
    %244 = vector.extract_strided_slice %243 {offsets = [0, 0], sizes = [8, 32], strides = [1, 1]} : vector<8x128xf32> to vector<8x32xf32>
    %cst_87 = arith.constant 5.000000e-01 : f32
    %245 = vector.broadcast %cst_87 : f32 to vector<8x32xf32>
    %246 = arith.mulf %245, %244 : vector<8x32xf32>
    %247 = math.tanh %246 : vector<8x32xf32>
    %cst_88 = arith.constant 5.000000e-01 : f32
    %248 = vector.broadcast %cst_88 : f32 to vector<8x32xf32>
    %249 = arith.mulf %248, %247 : vector<8x32xf32>
    %cst_89 = arith.constant 5.000000e-01 : f32
    %250 = vector.broadcast %cst_89 : f32 to vector<8x32xf32>
    %251 = arith.addf %249, %250 : vector<8x32xf32>
    %252 = vector.extract_strided_slice %243 {offsets = [0, 32], sizes = [8, 32], strides = [1, 1]} : vector<8x128xf32> to vector<8x32xf32>
    %cst_90 = arith.constant 5.000000e-01 : f32
    %253 = vector.broadcast %cst_90 : f32 to vector<8x32xf32>
    %254 = arith.mulf %253, %252 : vector<8x32xf32>
    %255 = math.tanh %254 : vector<8x32xf32>
    %cst_91 = arith.constant 5.000000e-01 : f32
    %256 = vector.broadcast %cst_91 : f32 to vector<8x32xf32>
    %257 = arith.mulf %256, %255 : vector<8x32xf32>
    %cst_92 = arith.constant 5.000000e-01 : f32
    %258 = vector.broadcast %cst_92 : f32 to vector<8x32xf32>
    %259 = arith.addf %257, %258 : vector<8x32xf32>
    %260 = vector.extract_strided_slice %243 {offsets = [0, 64], sizes = [8, 32], strides = [1, 1]} : vector<8x128xf32> to vector<8x32xf32>
    %261 = math.tanh %260 : vector<8x32xf32>
    %262 = vector.extract_strided_slice %243 {offsets = [0, 96], sizes = [8, 32], strides = [1, 1]} : vector<8x128xf32> to vector<8x32xf32>
    %cst_93 = arith.constant 5.000000e-01 : f32
    %263 = vector.broadcast %cst_93 : f32 to vector<8x32xf32>
    %264 = arith.mulf %263, %262 : vector<8x32xf32>
    %265 = math.tanh %264 : vector<8x32xf32>
    %cst_94 = arith.constant 5.000000e-01 : f32
    %266 = vector.broadcast %cst_94 : f32 to vector<8x32xf32>
    %267 = arith.mulf %266, %265 : vector<8x32xf32>
    %cst_95 = arith.constant 5.000000e-01 : f32
    %268 = vector.broadcast %cst_95 : f32 to vector<8x32xf32>
    %269 = arith.addf %267, %268 : vector<8x32xf32>
    %270 = arith.mulf %259, %227 : vector<8x32xf32>
    %271 = arith.mulf %251, %261 : vector<8x32xf32>
    %272 = arith.addf %270, %271 : vector<8x32xf32>
    %273 = math.tanh %272 : vector<8x32xf32>
    %274 = arith.mulf %269, %273 : vector<8x32xf32>
    %275 = arith.index_cast %233 : i32 to index
    %c0_96 = arith.constant 0 : index
    %276 = vector.load %arg10[%275, %c0_96] : memref<64x32xf32, #tpu.memory_space<vmem>>, vector<8x32xf32>
    tpu.vector_store %arg10[%275, %c0_96], %274 {strides = array<i32>} : memref<64x32xf32, #tpu.memory_space<vmem>>, vector<8x32xf32>,
    %c6_i32 = arith.constant 6 : i32
    %c8_i32_97 = arith.constant 8 : i32
    %277 = arith.muli %c6_i32, %c8_i32_97 : i32
    %278 = tpu.assume_multiple %277, 8 : i32
    %279 = arith.index_cast %278 : i32 to index
    %c0_98 = arith.constant 0 : index
    %280 = vector.load %arg2[%279, %c0_98] : memref<64x1xf32, #tpu.memory_space<vmem>>, vector<8x1xf32>
    %281 = vector.broadcast %280 : vector<8x1xf32> to vector<8x128xf32>
    %282 = vector.broadcast %3 : vector<1x128xf32> to vector<8x128xf32>
    %283 = arith.mulf %281, %282 : vector<8x128xf32>
    %284 = vector.broadcast %4 : vector<1x128xf32> to vector<8x128xf32>
    %285 = arith.addf %283, %284 : vector<8x128xf32>
    %c0_99 = arith.constant 0 : index
    %c0_100 = arith.constant 0 : index
    %286 = vector.load %arg5[%c0_99, %c0_100] : memref<32x128xf32, #tpu.memory_space<vmem>>, vector<32x128xf32>
    %cst_101 = arith.constant dense<0.000000e+00> : vector<8x128xf32>
    %287 = tpu.matmul %274, %286, %cst_101 {dimension_numbers = #tpu.dot_dimension_numbers<[1], [0], [0], [1], [0, 0, 1, 1], [], []>} : vector<8x32xf32>, vector<32x128xf32>, vector<8x128xf32> -> vector<8x128xf32>
    %288 = arith.addf %285, %287 : vector<8x128xf32>
    %289 = vector.extract_strided_slice %288 {offsets = [0, 0], sizes = [8, 32], strides = [1, 1]} : vector<8x128xf32> to vector<8x32xf32>
    %cst_102 = arith.constant 5.000000e-01 : f32
    %290 = vector.broadcast %cst_102 : f32 to vector<8x32xf32>
    %291 = arith.mulf %290, %289 : vector<8x32xf32>
    %292 = math.tanh %291 : vector<8x32xf32>
    %cst_103 = arith.constant 5.000000e-01 : f32
    %293 = vector.broadcast %cst_103 : f32 to vector<8x32xf32>
    %294 = arith.mulf %293, %292 : vector<8x32xf32>
    %cst_104 = arith.constant 5.000000e-01 : f32
    %295 = vector.broadcast %cst_104 : f32 to vector<8x32xf32>
    %296 = arith.addf %294, %295 : vector<8x32xf32>
    %297 = vector.extract_strided_slice %288 {offsets = [0, 32], sizes = [8, 32], strides = [1, 1]} : vector<8x128xf32> to vector<8x32xf32>
    %cst_105 = arith.constant 5.000000e-01 : f32
    %298 = vector.broadcast %cst_105 : f32 to vector<8x32xf32>
    %299 = arith.mulf %298, %297 : vector<8x32xf32>
    %300 = math.tanh %299 : vector<8x32xf32>
    %cst_106 = arith.constant 5.000000e-01 : f32
    %301 = vector.broadcast %cst_106 : f32 to vector<8x32xf32>
    %302 = arith.mulf %301, %300 : vector<8x32xf32>
    %cst_107 = arith.constant 5.000000e-01 : f32
    %303 = vector.broadcast %cst_107 : f32 to vector<8x32xf32>
    %304 = arith.addf %302, %303 : vector<8x32xf32>
    %305 = vector.extract_strided_slice %288 {offsets = [0, 64], sizes = [8, 32], strides = [1, 1]} : vector<8x128xf32> to vector<8x32xf32>
    %306 = math.tanh %305 : vector<8x32xf32>
    %307 = vector.extract_strided_slice %288 {offsets = [0, 96], sizes = [8, 32], strides = [1, 1]} : vector<8x128xf32> to vector<8x32xf32>
    %cst_108 = arith.constant 5.000000e-01 : f32
    %308 = vector.broadcast %cst_108 : f32 to vector<8x32xf32>
    %309 = arith.mulf %308, %307 : vector<8x32xf32>
    %310 = math.tanh %309 : vector<8x32xf32>
    %cst_109 = arith.constant 5.000000e-01 : f32
    %311 = vector.broadcast %cst_109 : f32 to vector<8x32xf32>
    %312 = arith.mulf %311, %310 : vector<8x32xf32>
    %cst_110 = arith.constant 5.000000e-01 : f32
    %313 = vector.broadcast %cst_110 : f32 to vector<8x32xf32>
    %314 = arith.addf %312, %313 : vector<8x32xf32>
    %315 = arith.mulf %304, %272 : vector<8x32xf32>
    %316 = arith.mulf %296, %306 : vector<8x32xf32>
    %317 = arith.addf %315, %316 : vector<8x32xf32>
    %318 = math.tanh %317 : vector<8x32xf32>
    %319 = arith.mulf %314, %318 : vector<8x32xf32>
    %320 = arith.index_cast %278 : i32 to index
    %c0_111 = arith.constant 0 : index
    %321 = vector.load %arg10[%320, %c0_111] : memref<64x32xf32, #tpu.memory_space<vmem>>, vector<8x32xf32>
    tpu.vector_store %arg10[%320, %c0_111], %319 {strides = array<i32>} : memref<64x32xf32, #tpu.memory_space<vmem>>, vector<8x32xf32>,
    %c7_i32 = arith.constant 7 : i32
    %c8_i32_112 = arith.constant 8 : i32
    %322 = arith.muli %c7_i32, %c8_i32_112 : i32
    %323 = tpu.assume_multiple %322, 8 : i32
    %324 = arith.index_cast %323 : i32 to index
    %c0_113 = arith.constant 0 : index
    %325 = vector.load %arg2[%324, %c0_113] : memref<64x1xf32, #tpu.memory_space<vmem>>, vector<8x1xf32>
    %326 = vector.broadcast %325 : vector<8x1xf32> to vector<8x128xf32>
    %327 = vector.broadcast %3 : vector<1x128xf32> to vector<8x128xf32>
    %328 = arith.mulf %326, %327 : vector<8x128xf32>
    %329 = vector.broadcast %4 : vector<1x128xf32> to vector<8x128xf32>
    %330 = arith.addf %328, %329 : vector<8x128xf32>
    %c0_114 = arith.constant 0 : index
    %c0_115 = arith.constant 0 : index
    %331 = vector.load %arg5[%c0_114, %c0_115] : memref<32x128xf32, #tpu.memory_space<vmem>>, vector<32x128xf32>
    %cst_116 = arith.constant dense<0.000000e+00> : vector<8x128xf32>
    %332 = tpu.matmul %319, %331, %cst_116 {dimension_numbers = #tpu.dot_dimension_numbers<[1], [0], [0], [1], [0, 0, 1, 1], [], []>} : vector<8x32xf32>, vector<32x128xf32>, vector<8x128xf32> -> vector<8x128xf32>
    %333 = arith.addf %330, %332 : vector<8x128xf32>
    %334 = vector.extract_strided_slice %333 {offsets = [0, 0], sizes = [8, 32], strides = [1, 1]} : vector<8x128xf32> to vector<8x32xf32>
    %cst_117 = arith.constant 5.000000e-01 : f32
    %335 = vector.broadcast %cst_117 : f32 to vector<8x32xf32>
    %336 = arith.mulf %335, %334 : vector<8x32xf32>
    %337 = math.tanh %336 : vector<8x32xf32>
    %cst_118 = arith.constant 5.000000e-01 : f32
    %338 = vector.broadcast %cst_118 : f32 to vector<8x32xf32>
    %339 = arith.mulf %338, %337 : vector<8x32xf32>
    %cst_119 = arith.constant 5.000000e-01 : f32
    %340 = vector.broadcast %cst_119 : f32 to vector<8x32xf32>
    %341 = arith.addf %339, %340 : vector<8x32xf32>
    %342 = vector.extract_strided_slice %333 {offsets = [0, 32], sizes = [8, 32], strides = [1, 1]} : vector<8x128xf32> to vector<8x32xf32>
    %cst_120 = arith.constant 5.000000e-01 : f32
    %343 = vector.broadcast %cst_120 : f32 to vector<8x32xf32>
    %344 = arith.mulf %343, %342 : vector<8x32xf32>
    %345 = math.tanh %344 : vector<8x32xf32>
    %cst_121 = arith.constant 5.000000e-01 : f32
    %346 = vector.broadcast %cst_121 : f32 to vector<8x32xf32>
    %347 = arith.mulf %346, %345 : vector<8x32xf32>
    %cst_122 = arith.constant 5.000000e-01 : f32
    %348 = vector.broadcast %cst_122 : f32 to vector<8x32xf32>
    %349 = arith.addf %347, %348 : vector<8x32xf32>
    %350 = vector.extract_strided_slice %333 {offsets = [0, 64], sizes = [8, 32], strides = [1, 1]} : vector<8x128xf32> to vector<8x32xf32>
    %351 = math.tanh %350 : vector<8x32xf32>
    %352 = vector.extract_strided_slice %333 {offsets = [0, 96], sizes = [8, 32], strides = [1, 1]} : vector<8x128xf32> to vector<8x32xf32>
    %cst_123 = arith.constant 5.000000e-01 : f32
    %353 = vector.broadcast %cst_123 : f32 to vector<8x32xf32>
    %354 = arith.mulf %353, %352 : vector<8x32xf32>
    %355 = math.tanh %354 : vector<8x32xf32>
    %cst_124 = arith.constant 5.000000e-01 : f32
    %356 = vector.broadcast %cst_124 : f32 to vector<8x32xf32>
    %357 = arith.mulf %356, %355 : vector<8x32xf32>
    %cst_125 = arith.constant 5.000000e-01 : f32
    %358 = vector.broadcast %cst_125 : f32 to vector<8x32xf32>
    %359 = arith.addf %357, %358 : vector<8x32xf32>
    %360 = arith.mulf %349, %317 : vector<8x32xf32>
    %361 = arith.mulf %341, %351 : vector<8x32xf32>
    %362 = arith.addf %360, %361 : vector<8x32xf32>
    %363 = math.tanh %362 : vector<8x32xf32>
    %364 = arith.mulf %359, %363 : vector<8x32xf32>
    %365 = arith.index_cast %323 : i32 to index
    %c0_126 = arith.constant 0 : index
    %366 = vector.load %arg10[%365, %c0_126] : memref<64x32xf32, #tpu.memory_space<vmem>>, vector<8x32xf32>
    tpu.vector_store %arg10[%365, %c0_126], %364 {strides = array<i32>} : memref<64x32xf32, #tpu.memory_space<vmem>>, vector<8x32xf32>,
    %c8_i32_127 = arith.constant 8 : i32
    %c0_128 = arith.constant 0 : index
    %c0_129 = arith.constant 0 : index
    %367 = vector.load %arg8[%c0_128, %c0_129] : memref<8x32xf32, #tpu.memory_space<vmem>>, vector<8x32xf32>
    tpu.vector_store %arg8[%c0_128, %c0_129], %364 {strides = array<i32>} : memref<8x32xf32, #tpu.memory_space<vmem>>, vector<8x32xf32>,
    %c0_130 = arith.constant 0 : index
    %c0_131 = arith.constant 0 : index
    %368 = vector.load %arg9[%c0_130, %c0_131] : memref<8x32xf32, #tpu.memory_space<vmem>>, vector<8x32xf32>
    tpu.vector_store %arg9[%c0_130, %c0_131], %362 {strides = array<i32>} : memref<8x32xf32, #tpu.memory_space<vmem>>, vector<8x32xf32>,
    %c0_132 = arith.constant 0 : index
    %c0_133 = arith.constant 0 : index
    %369 = vector.load %arg10[%c0_132, %c0_133] : memref<64x32xf32, #tpu.memory_space<vmem>>, vector<64x32xf32>
    %c0_134 = arith.constant 0 : index
    %c0_135 = arith.constant 0 : index
    %370 = vector.load %arg6[%c0_134, %c0_135] : memref<32x128xf32, #tpu.memory_space<vmem>>, vector<32x128xf32>
    %cst_136 = arith.constant dense<0.000000e+00> : vector<64x128xf32>
    %371 = tpu.matmul %369, %370, %cst_136 {dimension_numbers = #tpu.dot_dimension_numbers<[1], [0], [0], [1], [0, 0, 1, 1], [], []>} : vector<64x32xf32>, vector<32x128xf32>, vector<64x128xf32> -> vector<64x128xf32>
    %c0_137 = arith.constant 0 : index
    %c0_138 = arith.constant 0 : index
    %372 = vector.load %arg7[%c0_137, %c0_138] : memref<64x128xf32, #tpu.memory_space<vmem>>, vector<64x128xf32>
    tpu.vector_store %arg7[%c0_137, %c0_138], %371 {strides = array<i32>} : memref<64x128xf32, #tpu.memory_space<vmem>>, vector<64x128xf32>,
    return
  }
  func.func @transform_0(%arg0: i32, %arg1: i32) -> (i32, i32) {
    %c1_i32 = arith.constant 1 : i32
    %0 = arith.muli %arg1, %c1_i32 : i32
    %1 = arith.addi %0, %arg0 : i32
    %c0_i32 = arith.constant 0 : i32
    %c0_i32_0 = arith.constant 0 : i32
    return %1, %c0_i32 : i32, i32
  }
  func.func @transform_1(%arg0: i32, %arg1: i32) -> (i32, i32) {
    %c0_i32 = arith.constant 0 : i32
    %c0_i32_0 = arith.constant 0 : i32
    %c0_i32_1 = arith.constant 0 : i32
    return %c0_i32, %c0_i32_0 : i32, i32
  }
  func.func @transform_2(%arg0: i32, %arg1: i32) -> (i32, i32) {
    %c0_i32 = arith.constant 0 : i32
    %c0_i32_0 = arith.constant 0 : i32
    %c0_i32_1 = arith.constant 0 : i32
    return %c0_i32, %c0_i32_0 : i32, i32
  }
  func.func @transform_3(%arg0: i32, %arg1: i32) -> (i32, i32) {
    %c0_i32 = arith.constant 0 : i32
    %c0_i32_0 = arith.constant 0 : i32
    %c0_i32_1 = arith.constant 0 : i32
    return %c0_i32, %c0_i32_0 : i32, i32
  }
  func.func @transform_4(%arg0: i32, %arg1: i32) -> (i32, i32) {
    %c0_i32 = arith.constant 0 : i32
    %c0_i32_0 = arith.constant 0 : i32
    %c0_i32_1 = arith.constant 0 : i32
    return %c0_i32, %c0_i32_0 : i32, i32
  }
  func.func @transform_5(%arg0: i32, %arg1: i32) -> (i32, i32) {
    %c1_i32 = arith.constant 1 : i32
    %0 = arith.muli %arg1, %c1_i32 : i32
    %1 = arith.addi %0, %arg0 : i32
    %c0_i32 = arith.constant 0 : i32
    %c0_i32_0 = arith.constant 0 : i32
    return %1, %c0_i32 : i32, i32
  }
}

</mosaic_0001>

<bundles_post_ra>
// kernel: tpu_custom_call.1
= control target key start
LH: loop header
LB: loop body
LE: loop exit
PB: predicated region body
PF: predicated region fallthrough
CT: control target
= control target key end

     0   :  { %vm49_vm0 = vcmask 261120   ;;  %v819_v2 = vmov 0.0   ;;  %v820_v3 = vmov 0   ;;  %s995_s0 = inlined_call_operand.vmem [shape: f32[64,1], index: 0, kind: input, shape index: {}]   ;;  %s996_s1 = inlined_call_operand.vmem [shape: f32[1,128], index: 1, kind: input, shape index: {}]   ;;  %s997_s2 = inlined_call_operand.vmem [shape: f32[1,128], index: 2, kind: input, shape index: {}]   ;;  %s998_s3 = inlined_call_operand.vmem [shape: f32[32,128], index: 3, kind: input, shape index: {}]   ;;  %s999_s4 = inlined_call_operand.vmem [shape: f32[32,128], index: 4, kind: input, shape index: {}]   ;;  %s1000_s5 = inlined_call_operand.hbm [shape: f32[64,128], index: 5, kind: output, shape index: {}]  }
   0x1   :  { %v73_v0 = vld [vmem:[%s998_s3 + $0x18] sm:$0xff]  ;;  %v72_v1 = vld [vmem:[%s998_s3 + $0x10] sm:$0xff]  ;;  %50 = vst.msk [vmem:[#allocation2] sm:$0xff] %vm49_vm0, %v819_v2  ;;  %740 = vset.pattern.permute.xlu0 %v820_v3  ;;  %v56_v4 = vld [vmem:[%s995_s0] sm:$0xff] }
   0x2   :  { %90 = vmatpush.msra.mxu0 %v73_v0  ;;  %v71_v5 = vld [vmem:[%s998_s3 + $0x8] sm:$0xff]  ;;  %51 = vst.msk [vmem:[#allocation3] sm:$0xff] %vm49_vm0, %v819_v2  ;;  %59 = vperm.xlu0 %740, %v56_v4  }
   0x3   :  { %157 = vmatpush.msra.mxu1 %v73_v0 }
   0x4   :  { %10 = vsyncpa [#allocation6], 0  ;;  %91 = vmatpush.msra.mxu0 %v72_v1  ;;  %221 = vmatpush.msra.mxu2 %v73_v0  ;;  %v70_v6 = vld [vmem:[%s998_s3] sm:$0xff]  ;;  %s821_s28 = smov 32   ;;  %s822_s7 = smov 64   ;;  %v698_v17 = vld [vmem:[%s995_s0 + $0x8] sm:$0xff] }
   0x5   :  { %158 = vmatpush.msra.mxu1 %v72_v1  ;;  %741 = vset.pattern.permute.xlu2 %v820_v3  ;;  %v879_v9 = vld [vmem:[%s996_s1] ss:$0 sm:$0xff]  ;;  %v700_v50 = vld [vmem:[%s995_s0 + $0x10] sm:$0xff]  ;;  %s824_s27 = smov [#allocation5]   ;;  %s679_s6 = sshll.u32 %s1000_s5, 4  ;;  %s680_s6 = int_to_ptr.hbm [resolvable:$true] %s679_s6 }
   0x6   :  { %92 = vmatpush.msra.mxu0 %v71_v5  ;;  %222 = vmatpush.msra.mxu2 %v72_v1  ;;  %v885_v12 = vld [vmem:[%s997_s2] ss:$0 sm:$0xff]  ;;  %s677_s3 = sshll.u32 %s824_s27, 4  ;;  %s678_s3 = int_to_ptr.vmem [resolvable:$true] %s677_s3 }
   0x7   :  { %159 = vmatpush.msra.mxu1 %v71_v5  ;;  %285 = vmatpush.msra.mxu3 %v73_v0 }
   0x8   :  { %93 = vmatpush.msra.mxu0 %v70_v6  ;;  %223 = vmatpush.msra.mxu2 %v71_v5  ;;  %v54_v7 = vld [vmem:[#allocation2] sm:$0xff] }
   0x9   :  { %160 = vmatpush.msra.mxu1 %v70_v6  ;;  %286 = vmatpush.msra.mxu3 %v72_v1  ;;  %v55_v8 = vld [vmem:[#allocation3] sm:$0xff] }
   0xa   :  { %697 = vmatmul.msk.f32.vlgmr.msra.gmra.mxu0 %vm49_vm0, %v54_v7  ;;  %224 = vmatpush.msra.mxu2 %v70_v6 }
   0xb   :  { %105 = vrot.lane.b32.xlu1 %v55_v8, %s821_s28  ;;  %287 = vmatpush.msra.mxu3 %v71_v5 }
   0xc   :  { %742 = vset.pattern.permute.xlu1 %v820_v3  ;;  %349 = vmatpush.msrb.mxu0 %v73_v0 }
   0xd   :  { %288 = vmatpush.msra.mxu3 %v70_v6  ;;  %413 = vmatpush.msrb.mxu1 %v73_v0 }
   0xe   :  { %350 = vmatpush.msrb.mxu0 %v72_v1  ;;  %477 = vmatpush.msrb.mxu2 %v73_v0 }
   0xf   :  { %414 = vmatpush.msrb.mxu1 %v72_v1  ;;  %541 = vmatpush.msrb.mxu3 %v73_v0 }
  0x10   :  { %351 = vmatpush.msrb.mxu0 %v71_v5  ;;  %478 = vmatpush.msrb.mxu2 %v72_v1 }
  0x11   :  { %415 = vmatpush.msrb.mxu1 %v71_v5  ;;  %542 = vmatpush.msrb.mxu3 %v72_v1 }
  0x12   :  { %352 = vmatpush.msrb.mxu0 %v70_v6  ;;  %479 = vmatpush.msrb.mxu2 %v71_v5 }
  0x13   :  { %416 = vmatpush.msrb.mxu1 %v70_v6  ;;  %543 = vmatpush.msrb.mxu3 %v71_v5 }
  0x14   :  { %480 = vmatpush.msrb.mxu2 %v70_v6 }
  0x15   :  { %544 = vmatpush.msrb.mxu3 %v70_v6  ;;  %v702_v6 = vld [vmem:[%s995_s0 + $0x18] sm:$0xff] }
  0x74   :  { %v60_v10 = vpop.permute.xlu0 %59 }
  0x75   :  { %v65_v11 = vmul.f32 %v879_v9, %v60_v10 }
  0x77   :  { %v69_v13 = vadd.f32 %v885_v12, %v65_v11 }
  0x7d   :  { %v106_v24 = vpop.permute.xlu1 %105 }
  0x87   :  { %v95_v14 = vpop.f32.mrf.mxu0 }
  0x88   :  { %v98_v15 = vadd.f32 %v95_v14, %v69_v13 }
  0x8a   :  { %745 = vtanh.f32 %v98_v15  ;;  %v99_v18 = vmul.f32 0.5, %v98_v15 }
  0x8c   :  { %747 = vtanh.f32 %v99_v18 }
  0x90   :  { %v746_v16 = vpop.eup %745 }
  0x91   :  { %110 = vrot.lane.b32.xlu0 %v746_v16, %s822_s7 }
  0x92   :  { %v748_v19 = vpop.eup %747 }
  0x93   :  { %v101_v20 = vmul.f32 0.5, %v748_v19 }
  0x95   :  { %v102_v21 = vadd.f32 0.5, %v101_v20 }
  0x97   :  { %v108_v25 = vmul.f32 %v106_v24, %v102_v21 }
  0x99   :  { %134 = vperm.xlu0 %740, %v698_v17  }
 0x103   :  { %v111_v22 = vpop.permute.xlu0 %110 }
 0x104   :  { %v113_v23 = vmul.f32 %v111_v22, %v102_v21  ;;  %v704_v22 = vld [vmem:[%s995_s0 + $0x20] sm:$0xff] }
 0x106   :  { %115 = vrot.lane.b32.xlu1 %v113_v23, %s821_s28 }
 0x10b   :  { %v135_v32 = vpop.permute.xlu0 %134 }
 0x10c   :  { %v137_v33 = vmul.f32 %v879_v9, %v135_v32  ;;  %v592_v32 = vld [vmem:[%s999_s4] sm:$0xff] }
 0x10e   :  { %v138_v34 = vadd.f32 %v885_v12, %v137_v33 }
 0x178   :  { %v116_v26 = vpop.permute.xlu1 %115 }
 0x179   :  { %v118_v27 = vadd.f32 %v116_v26, %v108_v25 }
 0x17b   :  { %749 = vtanh.f32 %v118_v27 }
 0x181   :  { %v750_v28 = vpop.eup %749 }
 0x182   :  { %121 = vrot.lane.b32.xlu2 %v750_v28, %s822_s7 }
 0x1dc   :  { %v122_v29 = vpop.permute.xlu2 %121 }
 0x1dd   :  { %v124_v30 = vmul.f32 %v122_v29, %v102_v21  ;;  %v595_v29 = vld [vmem:[%s999_s4 + $0x18] sm:$0xff] }
 0x1de   :  { %632 = vmatpush.msra.mxu0 %v595_v29 }
 0x1df   :  { %126 = vrot.lane.b32.xlu2 %v124_v30, %s821_s28  ;;  %v594_v30 = vld [vmem:[%s999_s4 + $0x10] sm:$0xff] }
 0x1e0   :  { %633 = vmatpush.msra.mxu0 %v594_v30 }
 0x239   :  { %v127_v31 = vpop.permute.xlu2 %126 }
 0x23a   :  { %129 = vst.msk [vmem:[#allocation4] sm:$0xff] %vm49_vm0, %v127_v31  ;;  %699 = vmatmul.msk.f32.vlgmr.msra.gmra.mxu1 %vm49_vm0, %v127_v31  ;;  %v593_v31 = vld [vmem:[%s999_s4 + $0x8] sm:$0xff] }
 0x23b   :  { %720 = vmatpush.msra.mxu1 %v595_v29  ;;  %634 = vmatpush.msra.mxu0 %v593_v31 }
 0x23d   :  { %723 = vmatpush.msra.mxu1 %v594_v30  ;;  %635 = vmatpush.msra.mxu0 %v592_v32 }
 0x23f   :  { %726 = vmatpush.msra.mxu1 %v593_v31 }
 0x241   :  { %729 = vmatpush.msra.mxu1 %v592_v32 }
 0x2b7   :  { %v162_v35 = vpop.f32.mrf.mxu1 }
 0x2b8   :  { %v165_v36 = vadd.f32 %v162_v35, %v138_v34  ;;  %v584_v34 = vld [vmem:[#allocation4] sm:$0xff] }
 0x2ba   :  { %751 = vtanh.f32 %v165_v36  ;;  %v166_v38 = vmul.f32 0.5, %v165_v36 }
 0x2bc   :  { %753 = vtanh.f32 %v166_v38 }
 0x2c0   :  { %v752_v37 = vpop.eup %751 }
 0x2c1   :  { %173 = vrot.lane.b32.xlu1 %v752_v37, %s822_s7 }
 0x2c2   :  { %v754_v39 = vpop.eup %753 }
 0x2c3   :  { %v168_v40 = vmul.f32 0.5, %v754_v39 }
 0x2c5   :  { %v169_v41 = vadd.f32 0.5, %v168_v40 }
 0x2c7   :  { %v171_v44 = vmul.f32 %v169_v41, %v118_v27 }
 0x333   :  { %v174_v42 = vpop.permute.xlu1 %173 }
 0x334   :  { %v176_v43 = vmul.f32 %v174_v42, %v169_v41 }
 0x336   :  { %178 = vrot.lane.b32.xlu2 %v176_v43, %s821_s28 }
 0x33e   :  { %198 = vperm.xlu2 %741, %v700_v50   ;;  %v706_v50 = vld [vmem:[%s995_s0 + $0x28] sm:$0xff] }
 0x390   :  { %v179_v45 = vpop.permute.xlu2 %178 }
 0x391   :  { %v181_v46 = vadd.f32 %v179_v45, %v171_v44 }
 0x393   :  { %755 = vtanh.f32 %v181_v46 }
 0x398   :  { %v199_v52 = vpop.permute.xlu2 %198 }
 0x399   :  { %v756_v47 = vpop.eup %755  ;;  %v201_v53 = vmul.f32 %v879_v9, %v199_v52 }
 0x39a   :  { %184 = vrot.lane.b32.xlu0 %v756_v47, %s822_s7 }
 0x39b   :  { %v202_v54 = vadd.f32 %v885_v12, %v201_v53 }
 0x40c   :  { %v185_v48 = vpop.permute.xlu0 %184 }
 0x40d   :  { %v187_v49 = vmul.f32 %v185_v48, %v169_v41 }
 0x40f   :  { %189 = vrot.lane.b32.xlu1 %v187_v49, %s821_s28 }
 0x481   :  { %v190_v51 = vpop.permute.xlu1 %189 }
 0x482   :  { %193 = vst.msk [vmem:[#allocation4 + $0x8] sm:$0xff] %vm49_vm0, %v190_v51  ;;  %701 = vmatmul.msk.f32.vlgmr.msra.gmra.mxu2 %vm49_vm0, %v190_v51 }
 0x483   :  { %721 = vmatpush.msra.mxu2 %v595_v29 }
 0x485   :  { %724 = vmatpush.msra.mxu2 %v594_v30 }
 0x487   :  { %727 = vmatpush.msra.mxu2 %v593_v31 }
 0x489   :  { %730 = vmatpush.msra.mxu2 %v592_v32  ;;  %v585_v35 = vld [vmem:[#allocation4 + $0x8] sm:$0xff] }
 0x505   :  { %v226_v55 = vpop.f32.mrf.mxu2 }
 0x506   :  { %v229_v56 = vadd.f32 %v226_v55, %v202_v54 }
 0x508   :  { %757 = vtanh.f32 %v229_v56  ;;  %v230_v58 = vmul.f32 0.5, %v229_v56 }
 0x50a   :  { %759 = vtanh.f32 %v230_v58 }
 0x50e   :  { %v758_v57 = vpop.eup %757 }
 0x50f   :  { %237 = vrot.lane.b32.xlu0 %v758_v57, %s822_s7 }
 0x510   :  { %v760_v59 = vpop.eup %759 }
 0x511   :  { %v232_v60 = vmul.f32 0.5, %v760_v59 }
 0x513   :  { %v233_v61 = vadd.f32 0.5, %v232_v60 }
 0x515   :  { %v235_v0 = vmul.f32 %v233_v61, %v181_v46 }
 0x581   :  { %v238_v62 = vpop.permute.xlu0 %237 }
 0x582   :  { %v240_v63 = vmul.f32 %v238_v62, %v233_v61 }
 0x584   :  { %242 = vrot.lane.b32.xlu1 %v240_v63, %s821_s28 }
 0x58c   :  { %262 = vperm.xlu1 %742, %v702_v6  }
 0x5f6   :  { %v243_v1 = vpop.permute.xlu1 %242 }
 0x5f7   :  { %v245_v2 = vadd.f32 %v243_v1, %v235_v0 }
 0x5f9   :  { %761 = vtanh.f32 %v245_v2 }
 0x5fe   :  { %v263_v8 = vpop.permute.xlu1 %262 }
 0x5ff   :  { %v762_v3 = vpop.eup %761  ;;  %v265_v10 = vmul.f32 %v879_v9, %v263_v8 }
 0x600   :  { %248 = vrot.lane.b32.xlu2 %v762_v3, %s822_s7 }
 0x601   :  { %v266_v11 = vadd.f32 %v885_v12, %v265_v10 }
 0x65a   :  { %v249_v4 = vpop.permute.xlu2 %248 }
 0x65b   :  { %v251_v5 = vmul.f32 %v249_v4, %v233_v61 }
 0x65d   :  { %253 = vrot.lane.b32.xlu0 %v251_v5, %s821_s28 }
 0x6cf   :  { %v254_v7 = vpop.permute.xlu0 %253 }
 0x6d0   :  { %257 = vst.msk [vmem:[#allocation4 + $0x10] sm:$0xff] %vm49_vm0, %v254_v7  ;;  %703 = vmatmul.msk.f32.vlgmr.msra.gmra.mxu3 %vm49_vm0, %v254_v7 }
 0x6d1   :  { %722 = vmatpush.msra.mxu3 %v595_v29 }
 0x6d3   :  { %725 = vmatpush.msra.mxu3 %v594_v30 }
 0x6d5   :  { %728 = vmatpush.msra.mxu3 %v593_v31 }
 0x6d7   :  { %731 = vmatpush.msra.mxu3 %v592_v32  ;;  %v586_v58 = vld [vmem:[#allocation4 + $0x10] sm:$0xff] }
 0x753   :  { %v290_v13 = vpop.f32.mrf.mxu3 }
 0x754   :  { %v293_v14 = vadd.f32 %v290_v13, %v266_v11  ;;  %v708_v11 = vld [vmem:[%s995_s0 + $0x30] sm:$0xff] }
 0x756   :  { %763 = vtanh.f32 %v293_v14  ;;  %v294_v16 = vmul.f32 0.5, %v293_v14 }
 0x758   :  { %765 = vtanh.f32 %v294_v16 }
 0x75c   :  { %v764_v15 = vpop.eup %763 }
 0x75d   :  { %301 = vrot.lane.b32.xlu2 %v764_v15, %s822_s7 }
 0x75e   :  { %v766_v17 = vpop.eup %765 }
 0x75f   :  { %v296_v18 = vmul.f32 0.5, %v766_v17 }
 0x761   :  { %v297_v19 = vadd.f32 0.5, %v296_v18 }
 0x763   :  { %v299_v23 = vmul.f32 %v297_v19, %v245_v2 }
 0x7b7   :  { %v302_v20 = vpop.permute.xlu2 %301 }
 0x7b8   :  { %v304_v21 = vmul.f32 %v302_v20, %v297_v19 }
 0x7ba   :  { %306 = vrot.lane.b32.xlu0 %v304_v21, %s821_s28 }
 0x7c2   :  { %326 = vperm.xlu0 %740, %v704_v22  }
 0x82c   :  { %v307_v24 = vpop.permute.xlu0 %306 }
 0x82d   :  { %v309_v25 = vadd.f32 %v307_v24, %v299_v23 }
 0x82f   :  { %767 = vtanh.f32 %v309_v25 }
 0x834   :  { %v327_v36 = vpop.permute.xlu0 %326 }
 0x835   :  { %v768_v26 = vpop.eup %767  ;;  %v329_v37 = vmul.f32 %v879_v9, %v327_v36  ;;  %v710_v36 = vld [vmem:[%s995_s0 + $0x38] sm:$0xff]  ;;  %s823_s0 = smov 96  }
 0x836   :  { %312 = vrot.lane.b32.xlu1 %v768_v26, %s822_s7 }
 0x837   :  { %v330_v38 = vadd.f32 %v885_v12, %v329_v37 }
 0x8a8   :  { %v313_v27 = vpop.permute.xlu1 %312 }
 0x8a9   :  { %v315_v28 = vmul.f32 %v313_v27, %v297_v19 }
 0x8ab   :  { %317 = vrot.lane.b32.xlu2 %v315_v28, %s821_s28 }
 0x905   :  { %v318_v33 = vpop.permute.xlu2 %317 }
 0x906   :  { %321 = vst.msk [vmem:[#allocation4 + $0x18] sm:$0xff] %vm49_vm0, %v318_v33  ;;  %705 = vmatmul.msk.f32.vlgmr.msrb.gmra.mxu0 %vm49_vm0, %v318_v33 }
 0x90d   :  { %v587_v59 = vld [vmem:[#allocation4 + $0x18] sm:$0xff] }
 0x90e   :  { %712 = vmatmul.msk.f32.vlgmr.msra.gmra.mxu0 %vm49_vm0, %v584_v34 }
 0x916   :  { %713 = vmatmul.msk.f32.gmra.mxu0 %vm49_vm0, %v585_v35 }
 0x983   :  { %v354_v39 = vpop.f32.mrf.mxu0 }
 0x984   :  { %v357_v40 = vadd.f32 %v354_v39, %v330_v38 }
 0x986   :  { %769 = vtanh.f32 %v357_v40  ;;  %v358_v44 = vmul.f32 0.5, %v357_v40 }
 0x988   :  { %771 = vtanh.f32 %v358_v44 }
 0x98b   :  { %v637_v41 = vpop.f32.mrf.mxu0 }
 0x98c   :  { %v770_v42 = vpop.eup %769  ;;  %661 = vst [vmem:[#allocation5] sm:$0xff] %v637_v41 }
 0x98d   :  { %365 = vrot.lane.b32.xlu1 %v770_v42, %s822_s7 }
 0x98e   :  { %v772_v45 = vpop.eup %771 }
 0x98f   :  { %v360_v46 = vmul.f32 0.5, %v772_v45 }
 0x991   :  { %v361_v47 = vadd.f32 0.5, %v360_v46 }
 0x993   :  { %v640_v43 = vpop.f32.mrf.mxu0  ;;  %v363_v51 = vmul.f32 %v361_v47, %v309_v25 }
 0x994   :  { %662 = vst [vmem:[#allocation5 + $0x8] sm:$0xff] %v640_v43 }
 0x9ff   :  { %v366_v48 = vpop.permute.xlu1 %365 }
 0xa00   :  { %v368_v49 = vmul.f32 %v366_v48, %v361_v47 }
 0xa02   :  { %370 = vrot.lane.b32.xlu2 %v368_v49, %s821_s28 }
 0xa0a   :  { %390 = vperm.xlu2 %741, %v706_v50  }
 0xa5c   :  { %v371_v52 = vpop.permute.xlu2 %370 }
 0xa5d   :  { %v373_v53 = vadd.f32 %v371_v52, %v363_v51 }
 0xa5f   :  { %773 = vtanh.f32 %v373_v53 }
 0xa64   :  { %v391_v60 = vpop.permute.xlu2 %390 }
 0xa65   :  { %v774_v54 = vpop.eup %773  ;;  %v393_v61 = vmul.f32 %v879_v9, %v391_v60 }
 0xa66   :  { %376 = vrot.lane.b32.xlu0 %v774_v54, %s822_s7 }
 0xa67   :  { %v394_v62 = vadd.f32 %v885_v12, %v393_v61 }
 0xad8   :  { %v377_v55 = vpop.permute.xlu0 %376 }
 0xad9   :  { %v379_v56 = vmul.f32 %v377_v55, %v361_v47 }
 0xadb   :  { %381 = vrot.lane.b32.xlu1 %v379_v56, %s821_s28 }
 0xb4d   :  { %v382_v57 = vpop.permute.xlu1 %381 }
 0xb4e   :  { %385 = vst.msk [vmem:[#allocation4 + $0x20] sm:$0xff] %vm49_vm0, %v382_v57  ;;  %707 = vmatmul.msk.f32.vlgmr.msrb.gmra.mxu1 %vm49_vm0, %v382_v57 }
 0xb55   :  { %v588_v20 = vld [vmem:[#allocation4 + $0x20] sm:$0xff] }
 0xb56   :  { %714 = vmatmul.msk.f32.vlgmr.msra.gmra.mxu1 %vm49_vm0, %v586_v58 }
 0xb5e   :  { %715 = vmatmul.msk.f32.gmra.mxu1 %vm49_vm0, %v587_v59 }
 0xbcb   :  { %v418_v63 = vpop.f32.mrf.mxu1 }
 0xbcc   :  { %v421_v0 = vadd.f32 %v418_v63, %v394_v62 }
 0xbce   :  { %775 = vtanh.f32 %v421_v0  ;;  %v422_v4 = vmul.f32 0.5, %v421_v0 }
 0xbd0   :  { %777 = vtanh.f32 %v422_v4 }
 0xbd3   :  { %v643_v1 = vpop.f32.mrf.mxu1 }
 0xbd4   :  { %v776_v2 = vpop.eup %775  ;;  %663 = vst [vmem:[#allocation5 + $0x10] sm:$0xff] %v643_v1 }
 0xbd5   :  { %429 = vrot.lane.b32.xlu0 %v776_v2, %s822_s7 }
 0xbd6   :  { %v778_v5 = vpop.eup %777 }
 0xbd7   :  { %v424_v6 = vmul.f32 0.5, %v778_v5 }
 0xbd9   :  { %v425_v7 = vadd.f32 0.5, %v424_v6 }
 0xbdb   :  { %v646_v3 = vpop.f32.mrf.mxu1  ;;  %v427_v13 = vmul.f32 %v425_v7, %v373_v53 }
 0xbdc   :  { %664 = vst [vmem:[#allocation5 + $0x18] sm:$0xff] %v646_v3 }
 0xc47   :  { %v430_v8 = vpop.permute.xlu0 %429 }
 0xc48   :  { %v432_v10 = vmul.f32 %v430_v8, %v425_v7 }
 0xc4a   :  { %434 = vrot.lane.b32.xlu1 %v432_v10, %s821_s28 }
 0xc52   :  { %454 = vperm.xlu1 %742, %v708_v11  }
 0xcbc   :  { %v435_v14 = vpop.permute.xlu1 %434 }
 0xcbd   :  { %v437_v15 = vadd.f32 %v435_v14, %v427_v13 }
 0xcbf   :  { %779 = vtanh.f32 %v437_v15 }
 0xcc4   :  { %v455_v22 = vpop.permute.xlu1 %454 }
 0xcc5   :  { %v780_v16 = vpop.eup %779  ;;  %v457_v23 = vmul.f32 %v879_v9, %v455_v22 }
 0xcc6   :  { %440 = vrot.lane.b32.xlu2 %v780_v16, %s822_s7 }
 0xcc7   :  { %v458_v24 = vadd.f32 %v885_v12, %v457_v23 }
 0xd20   :  { %v441_v17 = vpop.permute.xlu2 %440 }
 0xd21   :  { %v443_v18 = vmul.f32 %v441_v17, %v425_v7 }
 0xd23   :  { %445 = vrot.lane.b32.xlu0 %v443_v18, %s821_s28 }
 0xd95   :  { %v446_v19 = vpop.permute.xlu0 %445 }
 0xd96   :  { %449 = vst.msk [vmem:[#allocation4 + $0x28] sm:$0xff] %vm49_vm0, %v446_v19  ;;  %709 = vmatmul.msk.f32.vlgmr.msrb.gmra.mxu2 %vm49_vm0, %v446_v19 }
 0xd9d   :  { %v589_v21 = vld [vmem:[#allocation4 + $0x28] sm:$0xff] }
 0xd9e   :  { %716 = vmatmul.msk.f32.vlgmr.msra.gmra.mxu2 %vm49_vm0, %v588_v20 }
 0xda6   :  { %717 = vmatmul.msk.f32.gmra.mxu2 %vm49_vm0, %v589_v21 }
 0xe19   :  { %v482_v25 = vpop.f32.mrf.mxu2 }
 0xe1a   :  { %v485_v26 = vadd.f32 %v482_v25, %v458_v24 }
 0xe1c   :  { %781 = vtanh.f32 %v485_v26  ;;  %v486_v30 = vmul.f32 0.5, %v485_v26 }
 0xe1e   :  { %783 = vtanh.f32 %v486_v30 }
 0xe21   :  { %v649_v27 = vpop.f32.mrf.mxu2 }
 0xe22   :  { %v782_v28 = vpop.eup %781  ;;  %665 = vst [vmem:[#allocation5 + $0x20] sm:$0xff] %v649_v27 }
 0xe23   :  { %493 = vrot.lane.b32.xlu2 %v782_v28, %s822_s7 }
 0xe24   :  { %v784_v31 = vpop.eup %783 }
 0xe25   :  { %v488_v32 = vmul.f32 0.5, %v784_v31 }
 0xe27   :  { %v489_v33 = vadd.f32 0.5, %v488_v32 }
 0xe29   :  { %v652_v29 = vpop.f32.mrf.mxu2  ;;  %v491_v37 = vmul.f32 %v489_v33, %v437_v15 }
 0xe2a   :  { %666 = vst [vmem:[#allocation5 + $0x28] sm:$0xff] %v652_v29 }
 0xe7d   :  { %v494_v34 = vpop.permute.xlu2 %493 }
 0xe7e   :  { %v496_v35 = vmul.f32 %v494_v34, %v489_v33 }
 0xe80   :  { %498 = vrot.lane.b32.xlu0 %v496_v35, %s821_s28 }
 0xe88   :  { %518 = vperm.xlu0 %740, %v710_v36  }
 0xef2   :  { %v499_v38 = vpop.permute.xlu0 %498 }
 0xef3   :  { %v501_v39 = vadd.f32 %v499_v38, %v491_v37 }
 0xef5   :  { %785 = vtanh.f32 %v501_v39 }
 0xefa   :  { %v519_v45 = vpop.permute.xlu0 %518 }
 0xefb   :  { %v786_v40 = vpop.eup %785  ;;  %v521_v46 = vmul.f32 %v879_v9, %v519_v45 }
 0xefc   :  { %504 = vrot.lane.b32.xlu1 %v786_v40, %s822_s7 }
 0xefd   :  { %v522_v47 = vadd.f32 %v885_v12, %v521_v46 }
 0xf6e   :  { %v505_v41 = vpop.permute.xlu1 %504 }
 0xf6f   :  { %v507_v42 = vmul.f32 %v505_v41, %v489_v33 }
 0xf71   :  { %509 = vrot.lane.b32.xlu2 %v507_v42, %s821_s28 }
 0xfcb   :  { %v510_v43 = vpop.permute.xlu2 %509 }
 0xfcc   :  { %513 = vst.msk [vmem:[#allocation4 + $0x30] sm:$0xff] %vm49_vm0, %v510_v43  ;;  %711 = vmatmul.msk.f32.vlgmr.msrb.gmra.mxu3 %vm49_vm0, %v510_v43 }
 0xfd3   :  { %v590_v44 = vld [vmem:[#allocation4 + $0x30] sm:$0xff] }
 0xfd4   :  { %718 = vmatmul.msk.f32.vlgmr.msra.gmra.mxu3 %vm49_vm0, %v590_v44 }
0x104f   :  { %v546_v48 = vpop.f32.mrf.mxu3 }
0x1050   :  { %v549_v49 = vadd.f32 %v546_v48, %v522_v47 }
0x1052   :  { %787 = vtanh.f32 %v549_v49  ;;  %v550_v52 = vmul.f32 0.5, %v549_v49 }
0x1054   :  { %789 = vtanh.f32 %v550_v52 }
0x1057   :  { %v655_v50 = vpop.f32.mrf.mxu3 }
0x1058   :  { %v788_v51 = vpop.eup %787  ;;  %667 = vst [vmem:[#allocation5 + $0x30] sm:$0xff] %v655_v50 }
0x1059   :  { %557 = vrot.lane.b32.xlu1 %v788_v51, %s822_s7 }
0x105a   :  { %v790_v53 = vpop.eup %789 }
0x105b   :  { %v552_v54 = vmul.f32 0.5, %v790_v53 }
0x105d   :  { %v553_v55 = vadd.f32 0.5, %v552_v54 }
0x105f   :  { %v555_v9 = vmul.f32 %v553_v55, %v501_v39 }
0x10cb   :  { %v558_v56 = vpop.permute.xlu1 %557 }
0x10cc   :  { %v560_v57 = vmul.f32 %v558_v56, %v553_v55 }
0x10ce   :  { %562 = vrot.lane.b32.xlu2 %v560_v57, %s821_s28 }
0x1128   :  { %v563_v58 = vpop.permute.xlu2 %562 }
0x1129   :  { %v565_v12 = vadd.f32 %v563_v58, %v555_v9 }
0x112b   :  { %791 = vtanh.f32 %v565_v12  ;;  %580 = vrot.lane.b32.xlu2 %v565_v12, %s823_s0 }
0x1131   :  { %v792_v59 = vpop.eup %791 }
0x1132   :  { %568 = vrot.lane.b32.xlu0 %v792_v59, %s822_s7  ;;  %s825_s7 = smov 128  }
0x1185   :  { %v581_v60 = vpop.permute.xlu2 %580 }
0x1186   :  { %583 = vst.msk [vmem:[#allocation3] sm:$0xff] %vm49_vm0, %v581_v60 }
0x11a4   :  { %v569_v61 = vpop.permute.xlu0 %568 }
0x11a5   :  { %v571_v62 = vmul.f32 %v569_v61, %v553_v55 }
0x11a7   :  { %573 = vrot.lane.b32.xlu1 %v571_v62, %s821_s28  ;;  %s826_s28 = smov 8  }
0x1219   :  { %v574_v63 = vpop.permute.xlu1 %573 }
0x121a   :  { %577 = vst.msk [vmem:[#allocation4 + $0x38] sm:$0xff] %vm49_vm0, %v574_v63 }
0x121b   :  { %578 = vst.msk [vmem:[#allocation2] sm:$0xff] %vm49_vm0, %v574_v63 }
0x1221   :  { %v591_v0 = vld [vmem:[#allocation4 + $0x38] sm:$0xff] }
0x1222   :  { %719 = vmatmul.msk.f32.gmra.mxu3 %vm49_vm0, %v591_v0 }
0x12a5   :  { %v658_v1 = vpop.f32.mrf.mxu3 }
0x12a6   :  { %668 = vst [vmem:[#allocation5 + $0x38] sm:$0xff] %v658_v1 }
0x12a7   :  { %685 = dma.vmem_to_hbm [thread:$0]  %s678_s3, 1024, %s680_s6, [#allocation6], %s825_s7, %s825_s7, %s826_s28  }
0x12a8   :  { %817 = dma.done.wait [#allocation6], 1024  }
0x12a9   :  { %818 = vsyncadd [#allocation6], 4294966272 }
0x12aa   :  { %690 = vsyncpa [#allocation6], 1 }

</bundles_post_ra>
